<compile_context>
chip_gen: v7x
topology: tpu7x:2x2x1
jax: 0.10.0
libtpu: 0.0.40
codegen_flags: <defaults>
</compile_context>

<pallas_src>
import jax
import jax.numpy as jnp
from jax.experimental import pallas as pl
from jax.experimental.pallas import tpu as pltpu


def conv1x1_pad1_sub4_kernel(w_ref, c_ref, x_ref, o_ref):
    """w_ref: SMEM (1, C_in) f32 conv weights (1x1 kernel squeezed).
       c_ref: SMEM (1, 1)  f32 folded constant = bias - 4.0.
       x_ref: VMEM (1, C_in, H, W)   one batch element of the input.
       o_ref: VMEM (1, 1, H+2, W+2)  padded conv output minus 4.
    """
    c_in = x_ref.shape[1]
    h, w = x_ref.shape[2], x_ref.shape[3]
    c = c_ref[0, 0]

    # Zero padding  =>  every border pixel of (conv(x) - 4) equals bias - 4.
    # Fill the whole padded block with the constant once ...
    o_ref[0, 0] = jnp.full((h + 2, w + 2), c, dtype=o_ref.dtype)

    # ... then overwrite the interior with the fused VPU weighted sum
    # (single expression, scalars hoisted; per-tile upcast supports bf16 x).
    interior = c
    for ci in range(c_in):  # static unroll (C_in == 3)
        interior = interior + w_ref[0, ci] * x_ref[0, ci].astype(jnp.float32)
    o_ref[0, 0, 1:h + 1, 1:w + 1] = interior


def conv1x1_pad1_sub4(x_nchw, weight, bias):
    """x_nchw: (N, C_in, H, W)
       weight: (C_out, C_in, 1, 1) (PyTorch layout) or (C_out, C_in)
       bias:   (C_out,)
       returns (N, C_out, H+2, W+2) f32 == Conv2d(C_in, 1, 1, padding=1)(x) - 4
    """
    n, c_in, h, w = x_nchw.shape
    weight2d = jnp.asarray(weight, jnp.float32).reshape(-1, c_in)  # squeeze 1x1 spatial dims
    c_out = weight2d.shape[0]
    assert c_out == 1, "module is Conv2d(3, 1, kernel_size=1)"

    # Per-batch full-extent blocks; double-buffered VMEM footprint is tiny for
    # the module's 64x64 input.  (A row-tiled variant would only be needed for
    # very large spatial extents.)
    block_bytes = 2 * 4 * (c_in * h * w + (h + 2) * (w + 2))
    assert block_bytes < 24 * 1024 * 1024, "spatial extent too large for single-block path"

    w_sm = weight2d                                                   # (1, C_in) -> SMEM
    c_sm = jnp.asarray(bias, jnp.float32).reshape(1, 1) - 4.0         # folded bias - 4.0

    cost = pl.CostEstimate(
        flops=2 * n * c_in * h * w,
        transcendentals=0,
        bytes_accessed=4 * (n * c_in * h * w + n * (h + 2) * (w + 2)),
    )

    return pl.pallas_call(
        conv1x1_pad1_sub4_kernel,
        out_shape=jax.ShapeDtypeStruct((n, 1, h + 2, w + 2), jnp.float32),
        grid=(n,),
        in_specs=[
            pl.BlockSpec(memory_space=pltpu.MemorySpace.SMEM),          # weights
            pl.BlockSpec(memory_space=pltpu.MemorySpace.SMEM),          # bias - 4.0
            pl.BlockSpec((1, c_in, h, w), lambda b: (b, 0, 0, 0)),      # input image
        ],
        out_specs=pl.BlockSpec((1, 1, h + 2, w + 2), lambda b: (b, 0, 0, 0)),
        compiler_params=pltpu.CompilerParams(
            dimension_semantics=("parallel",),
        ),
        cost_estimate=cost,
    )(w_sm, c_sm, x_nchw)


if __name__ == "__main__":
    key = jax.random.PRNGKey(0)
    kx, kw, kb = jax.random.split(key, 3)

    # Shapes of the PyTorch module: x = randn(1, 3, 64, 64), Conv2d(3 -> 1, 1x1, pad=1)
    N, C_IN, H, W = 1, 3, 64, 64
    C_OUT = 1

    x = jax.random.normal(kx, (N, C_IN, H, W), dtype=jnp.float32)
    weight = jax.random.normal(kw, (C_OUT, C_IN, 1, 1), dtype=jnp.float32) * 0.1
    bias = jax.random.normal(kb, (C_OUT,), dtype=jnp.float32) * 0.1

    out = jax.jit(conv1x1_pad1_sub4)(x, weight, bias)
    out = jax.block_until_ready(out)

    # Reference in plain JAX: zero-padded 1x1 conv == per-pixel weighted sum.
    x_pad = jnp.pad(x, ((0, 0), (0, 0), (1, 1), (1, 1)))
    ref = (
        jnp.einsum("nchw,oc->nohw", x_pad, weight.reshape(C_OUT, C_IN))
        + bias.reshape(1, C_OUT, 1, 1)
        - 4.0
    )
    assert out.shape == (N, C_OUT, H + 2, W + 2), out.shape
    assert jnp.allclose(out, ref, atol=1e-5, rtol=1e-5)

    print("KERNEL_OK")
</pallas_src>

<mosaic_0001>
module attributes {stable_mosaic.version = 11 : i64} {
  func.func @conv1x1_pad1_sub4_kernel(%arg0: i32, %arg1: memref<1x3xf32, #tpu.memory_space<smem>>, %arg2: memref<1x1xf32, #tpu.memory_space<smem>>, %arg3: memref<1x3x64x64xf32, #tpu.memory_space<vmem>>, %arg4: memref<1x1x66x66xf32, #tpu.memory_space<vmem>>) attributes {dimension_semantics = [#tpu.dimension_semantics<parallel>], iteration_bounds = array<i64: 1>, scalar_prefetch = 0 : i64, scratch_operands = 0 : i64, tpu.core_type = #tpu.core_type<tc>, window_params = [{transform_indices = @transform_0, window_bounds = array<i64: 1, 3>}, {transform_indices = @transform_1, window_bounds = array<i64: 1, 1>}, {transform_indices = @transform_2, window_bounds = array<i64: 1, 3, 64, 64>}, {transform_indices = @transform_3, window_bounds = array<i64: 1, 1, 66, 66>}]} {
    %c0 = arith.constant 0 : index
    %c0_0 = arith.constant 0 : index
    %0 = memref.load %arg2[%c0, %c0_0] : memref<1x1xf32, #tpu.memory_space<smem>>
    %1 = vector.broadcast %0 : f32 to vector<66x66xf32>
    %c0_1 = arith.constant 0 : index
    %c0_2 = arith.constant 0 : index
    %c0_3 = arith.constant 0 : index
    %c0_4 = arith.constant 0 : index
    %2 = vector.load %arg4[%c0_1, %c0_2, %c0_3, %c0_4] : memref<1x1x66x66xf32, #tpu.memory_space<vmem>>, vector<1x1x66x66xf32>
    %3 = vector.shape_cast %2 : vector<1x1x66x66xf32> to vector<66x66xf32>
    %4 = vector.shape_cast %1 : vector<66x66xf32> to vector<1x1x66x66xf32>
    tpu.vector_store %arg4[%c0_1, %c0_2, %c0_3, %c0_4], %4 {strides = array<i32>} : memref<1x1x66x66xf32, #tpu.memory_space<vmem>>, vector<1x1x66x66xf32>,
    %c0_5 = arith.constant 0 : index
    %c0_6 = arith.constant 0 : index
    %5 = memref.load %arg1[%c0_5, %c0_6] : memref<1x3xf32, #tpu.memory_space<smem>>
    %c0_7 = arith.constant 0 : index
    %c0_8 = arith.constant 0 : index
    %c0_9 = arith.constant 0 : index
    %c0_10 = arith.constant 0 : index
    %6 = vector.load %arg3[%c0_7, %c0_8, %c0_9, %c0_10] : memref<1x3x64x64xf32, #tpu.memory_space<vmem>>, vector<1x1x64x64xf32>
    %7 = vector.shape_cast %6 : vector<1x1x64x64xf32> to vector<64x64xf32>
    %8 = vector.broadcast %5 : f32 to vector<64x64xf32>
    %9 = arith.mulf %8, %7 : vector<64x64xf32>
    %10 = vector.broadcast %0 : f32 to vector<64x64xf32>
    %11 = arith.addf %10, %9 : vector<64x64xf32>
    %c0_11 = arith.constant 0 : index
    %c1 = arith.constant 1 : index
    %12 = memref.load %arg1[%c0_11, %c1] : memref<1x3xf32, #tpu.memory_space<smem>>
    %c0_12 = arith.constant 0 : index
    %c1_13 = arith.constant 1 : index
    %c0_14 = arith.constant 0 : index
    %c0_15 = arith.constant 0 : index
    %13 = vector.load %arg3[%c0_12, %c1_13, %c0_14, %c0_15] : memref<1x3x64x64xf32, #tpu.memory_space<vmem>>, vector<1x1x64x64xf32>
    %14 = vector.shape_cast %13 : vector<1x1x64x64xf32> to vector<64x64xf32>
    %15 = vector.broadcast %12 : f32 to vector<64x64xf32>
    %16 = arith.mulf %15, %14 : vector<64x64xf32>
    %17 = arith.addf %11, %16 : vector<64x64xf32>
    %c0_16 = arith.constant 0 : index
    %c2 = arith.constant 2 : index
    %18 = memref.load %arg1[%c0_16, %c2] : memref<1x3xf32, #tpu.memory_space<smem>>
    %c0_17 = arith.constant 0 : index
    %c2_18 = arith.constant 2 : index
    %c0_19 = arith.constant 0 : index
    %c0_20 = arith.constant 0 : index
    %19 = vector.load %arg3[%c0_17, %c2_18, %c0_19, %c0_20] : memref<1x3x64x64xf32, #tpu.memory_space<vmem>>, vector<1x1x64x64xf32>
    %20 = vector.shape_cast %19 : vector<1x1x64x64xf32> to vector<64x64xf32>
    %21 = vector.broadcast %18 : f32 to vector<64x64xf32>
    %22 = arith.mulf %21, %20 : vector<64x64xf32>
    %23 = arith.addf %17, %22 : vector<64x64xf32>
    %c0_21 = arith.constant 0 : index
    %c0_22 = arith.constant 0 : index
    %c1_23 = arith.constant 1 : index
    %c1_24 = arith.constant 1 : index
    %24 = vector.load %arg4[%c0_21, %c0_22, %c1_23, %c1_24] : memref<1x1x66x66xf32, #tpu.memory_space<vmem>>, vector<1x1x64x64xf32>
    %25 = vector.shape_cast %24 : vector<1x1x64x64xf32> to vector<64x64xf32>
    %26 = vector.shape_cast %23 : vector<64x64xf32> to vector<1x1x64x64xf32>
    tpu.vector_store %arg4[%c0_21, %c0_22, %c1_23, %c1_24], %26 {strides = array<i32>} : memref<1x1x66x66xf32, #tpu.memory_space<vmem>>, vector<1x1x64x64xf32>,
    return
  }
  func.func @transform_0(%arg0: i32) -> (i32, i32) {
    %c0_i32 = arith.constant 0 : i32
    %c0_i32_0 = arith.constant 0 : i32
    %c0_i32_1 = arith.constant 0 : i32
    return %c0_i32, %c0_i32_0 : i32, i32
  }
  func.func @transform_1(%arg0: i32) -> (i32, i32) {
    %c0_i32 = arith.constant 0 : i32
    %c0_i32_0 = arith.constant 0 : i32
    %c0_i32_1 = arith.constant 0 : i32
    return %c0_i32, %c0_i32_0 : i32, i32
  }
  func.func @transform_2(%arg0: i32) -> (i32, i32, i32, i32) {
    %c0_i32 = arith.constant 0 : i32
    %c0_i32_0 = arith.constant 0 : i32
    %c0_i32_1 = arith.constant 0 : i32
    %c0_i32_2 = arith.constant 0 : i32
    return %arg0, %c0_i32, %c0_i32_0, %c0_i32_1 : i32, i32, i32, i32
  }
  func.func @transform_3(%arg0: i32) -> (i32, i32, i32, i32) {
    %c0_i32 = arith.constant 0 : i32
    %c0_i32_0 = arith.constant 0 : i32
    %c0_i32_1 = arith.constant 0 : i32
    %c0_i32_2 = arith.constant 0 : i32
    return %arg0, %c0_i32, %c0_i32_0, %c0_i32_1 : i32, i32, i32, i32
  }
}

</mosaic_0001>

<bundles_post_ra>
// kernel: conv1x1_pad1_sub4.1
= control target key start
LH: loop header
LB: loop body
LE: loop exit
PB: predicated region body
PF: predicated region fallthrough
CT: control target
= control target key end

     0   :  { %9 = vsyncpa [#allocation5], 0  ;;  %s358_s0 = inlined_call_operand.vmem [shape: f32[1,3], index: 0, kind: input, shape index: {}]   ;;  %s359_s1 = inlined_call_operand.<no memory space> [shape: f32[1,1], index: 1, kind: input, shape index: {}]   ;;  %s360_s2 = inlined_call_operand.hbm [shape: f32[1,3,64,64], index: 2, kind: input, shape index: {}]   ;;  %s361_s3 = inlined_call_operand.vmem [shape: f32[1,1,66,66], index: 3, kind: output, shape index: {}]  }
   0x1   :  { %s17_s14 = sshll.u32 %s358_s0, 4  ;;  %s18_s14 = int_to_ptr.vmem [resolvable:$true] %s17_s14 }
   0x2   :  { %10 = vsyncpa [#allocation4], 0  ;;  %s189_s15 = scalar_lea.vmem %s18_s14, 16  ;;  %p194_p1 = scmp.lt.s32.totalorder %s18_s14, %s18_s14 }
   0x3   :  { %p190_p0 = scmp.ne.s32.totalorder %s18_s14, %s189_s15  ;;  %p195_p2 = scmp.lt.s32.totalorder %s189_s15, %s189_s15 }
   0x5   :  { %p196_p3 = por %p195_p2, %p194_p1 }
   0x7   :  { %p197_p4 = pnand %p196_p3, %p190_p0 }
   0x9   :  { %200 = shalt.err (!%p197_p4)
}
   0xa   :  { %s227_s16 = smov [#allocation3]   ;;  %s228_s17 = smov [#allocation6]  }
   0xb   :  { %20 = dma.vmem_to_smem %s18_s14, 16, %s227_s16, [#allocation5]  }
   0xc   :  { %s28_s18 = sshll.u32 %s228_s17, 4  ;;  %s201_s21 = scalar_lea.hbm %s360_s2, 3072  ;;  %s29_s18 = int_to_ptr.vmem [resolvable:$true] %s28_s18 }
   0xd   :  { %p202_p5 = scmp.ne.s32.totalorder %s360_s2, %s201_s21  ;;  %p205_p6 = scmp.lt.u32.totalorder %s201_s21, %s360_s2 }
   0xf   :  { %p207_p7 = pnand %p205_p6, %p202_p5 }
  0x11   :  { %210 = shalt.err (!%p207_p7)
}
  0x12   :  { %s211_s25 = scalar_lea.vmem %s29_s18, 3072  ;;  %p216_p9 = scmp.lt.s32.totalorder %s29_s18, %s29_s18 }
  0x13   :  { %p212_p8 = scmp.ne.s32.totalorder %s29_s18, %s211_s25  ;;  %p217_p10 = scmp.lt.s32.totalorder %s211_s25, %s211_s25 }
  0x15   :  { %p218_p11 = por %p217_p10, %p216_p9 }
  0x17   :  { %p219_p12 = pnand %p218_p11, %p212_p8 }
  0x19   :  { %222 = shalt.err (!%p219_p12)
}
  0x1a   :  { %s229_s26 = smov 128   ;;  %s230_s27 = smov 8  }
  0x1b   :  { %34 = dma.hbm_to_vmem [thread:$0]  %s360_s2, 3072, %s29_s18, [#allocation4], %s229_s26, %s229_s26, %s230_s27  }
  0x1c   :  { %223 = dma.done.wait [#allocation5], 16  }
  0x1d   :  { %224 = vsyncadd [#allocation5], 4294967280 }
  0x1e   :  { %225 = dma.done.wait [#allocation4], 3072  }
  0x1f   :  { %226 = vsyncadd [#allocation4], 4294964224 }
  0x20   :  { %41 = sfence }
  0x21   :  { %s55_s30 = sld [smem:[#allocation3]]  ;;  %s182_s4 = sld [smem:[#allocation3 + $0x1]]  ;;  %v270_v0 = vstv %s359_s1  ;;  %vm44_vm0 = vcmask 539648   ;;  %v58_v1 = vld [vmem:[#allocation6 + $0x10] sm:$0xff]  ;;  %v56_v4 = vld [vmem:[#allocation6] sm:$0xff]  ;;  %v59_v7 = vld [vmem:[#allocation6 + $0x18] sm:$0xff] }
  0x22   :  { %s183_s5 = sld [smem:[#allocation3 + $0x2]]  ;;  %47 = vst.msk [vmem:[%s361_s3 + $0x10] sm:$0xff] %vm44_vm0, %v270_v0  ;;  %48 = vst.msk [vmem:[%s361_s3 + $0x18] sm:$0xff] %vm44_vm0, %v270_v0  ;;  %v85_v2 = vld [vmem:[#allocation6 + $0x50] sm:$0xff]  ;;  %v83_v5 = vld [vmem:[#allocation6 + $0x40] sm:$0xff]  ;;  %s231_s22 = smov 1  }
  0x23   :  { %45 = vst.msk [vmem:[%s361_s3] sm:$0xff] %vm44_vm0, %v270_v0  ;;  %46 = vst.msk [vmem:[%s361_s3 + $0x8] sm:$0xff] %vm44_vm0, %v270_v0  ;;  %v112_v3 = vld [vmem:[#allocation6 + $0x90] sm:$0xff]  ;;  %v110_v6 = vld [vmem:[#allocation6 + $0x80] sm:$0xff]  ;;  %vm53_vm1 = vcmask 533504   ;;  %vm167_vm2 = vcmask 531464  }
  0x24   :  { %49 = vst.msk [vmem:[%s361_s3 + $0x20] sm:$0xff] %vm44_vm0, %v270_v0  ;;  %50 = vst.msk [vmem:[%s361_s3 + $0x28] sm:$0xff] %vm44_vm0, %v270_v0  ;;  %v86_v10 = vld [vmem:[#allocation6 + $0x58] sm:$0xff]  ;;  %v57_v16 = vld [vmem:[#allocation6 + $0x8] sm:$0xff] }
  0x25   :  { %51 = vst.msk [vmem:[%s361_s3 + $0x30] sm:$0xff] %vm44_vm0, %v270_v0  ;;  %52 = vst.msk [vmem:[%s361_s3 + $0x38] sm:$0xff] %vm44_vm0, %v270_v0  ;;  %v113_v11 = vld [vmem:[#allocation6 + $0x98] sm:$0xff]  ;;  %v84_v17 = vld [vmem:[#allocation6 + $0x48] sm:$0xff] }
  0x26   :  { %v111_v18 = vld [vmem:[#allocation6 + $0x88] sm:$0xff]  ;;  %v60_v30 = vld [vmem:[#allocation6 + $0x20] sm:$0xff]  ;;  %v63_v45 = vld [vmem:[#allocation6 + $0x38] sm:$0xff]  ;;  %54 = vst.msk [vmem:[%s361_s3 + $0x40] sm:$0x3] %vm53_vm1, %v270_v0 }
  0x27   :  { %v64_v8 = vstv %s55_s30  ;;  %v91_v9 = vstv %s182_s4  ;;  %v61_v23 = vld [vmem:[#allocation6 + $0x28] sm:$0xff]  ;;  %v87_v35 = vld [vmem:[#allocation6 + $0x60] sm:$0xff]  ;;  %v90_v46 = vld [vmem:[#allocation6 + $0x78] sm:$0xff] }
  0x28   :  { %v67_v12 = vmul.f32 %v64_v8, %v58_v1  ;;  %v94_v13 = vmul.f32 %v91_v9, %v85_v2  ;;  %v304_v14 = vstv %s183_s5  ;;  %v65_v15 = vmul.f32 %v64_v8, %v56_v4  ;;  %v88_v24 = vld [vmem:[#allocation6 + $0x68] sm:$0xff]  ;;  %v114_v40 = vld [vmem:[#allocation6 + $0xa0] sm:$0xff]  ;;  %v62_v51 = vld [vmem:[#allocation6 + $0x30] sm:$0xff] }
  0x29   :  { %v121_v19 = vmul.f32 %v304_v14, %v112_v3  ;;  %v92_v20 = vmul.f32 %v91_v9, %v83_v5  ;;  %v119_v21 = vmul.f32 %v304_v14, %v110_v6  ;;  %v68_v22 = vmul.f32 %v64_v8, %v59_v7  ;;  %v115_v29 = vld [vmem:[#allocation6 + $0xa8] sm:$0xff]  ;;  %v89_v56 = vld [vmem:[#allocation6 + $0x70] sm:$0xff]  ;;  %v117_v60 = vld [vmem:[#allocation6 + $0xb8] sm:$0xff] }
  0x2a   :  { %v75_v25 = vadd.f32 %v67_v12, %v270_v0  ;;  %v73_v26 = vadd.f32 %v65_v15, %v270_v0  ;;  %v95_v27 = vmul.f32 %v91_v9, %v86_v10  ;;  %v122_v28 = vmul.f32 %v304_v14, %v113_v11  ;;  %v116_v1 = vld [vmem:[#allocation6 + $0xb0] sm:$0xff] }
  0x2b   :  { %v76_v31 = vadd.f32 %v68_v22, %v270_v0  ;;  %v66_v32 = vmul.f32 %v64_v8, %v57_v16  ;;  %v93_v33 = vmul.f32 %v91_v9, %v84_v17  ;;  %v120_v34 = vmul.f32 %v304_v14, %v111_v18 }
  0x2c   :  { %v102_v36 = vadd.f32 %v94_v13, %v75_v25  ;;  %v100_v37 = vadd.f32 %v92_v20, %v73_v26  ;;  %v70_v38 = vmul.f32 %v64_v8, %v61_v23  ;;  %v97_v39 = vmul.f32 %v91_v9, %v88_v24 }
  0x2d   :  { %v103_v41 = vadd.f32 %v95_v27, %v76_v31  ;;  %v74_v42 = vadd.f32 %v66_v32, %v270_v0  ;;  %v124_v43 = vmul.f32 %v304_v14, %v115_v29  ;;  %v69_v44 = vmul.f32 %v64_v8, %v60_v30 }
  0x2e   :  { %v129_v47 = vadd.f32 %v121_v19, %v102_v36  ;;  %v127_v48 = vadd.f32 %v119_v21, %v100_v37  ;;  %v78_v49 = vadd.f32 %v70_v38, %v270_v0  ;;  %v96_v50 = vmul.f32 %v91_v9, %v87_v35 }
  0x2f   :  { %v130_v52 = vadd.f32 %v122_v28, %v103_v41  ;;  %v101_v53 = vadd.f32 %v93_v33, %v74_v42  ;;  %v77_v54 = vadd.f32 %v69_v44, %v270_v0  ;;  %v123_v55 = vmul.f32 %v304_v14, %v114_v40 }
  0x30   :  { %147 = vrot.lane.b32.xlu1 %v129_v47, %s231_s22  ;;  %143 = vrot.lane.b32.xlu0 %v127_v48, %s231_s22  ;;  %v105_v57 = vadd.f32 %v97_v39, %v78_v49  ;;  %v72_v58 = vmul.f32 %v64_v8, %v63_v45  ;;  %v99_v59 = vmul.f32 %v91_v9, %v90_v46 }
  0x31   :  { %v128_v61 = vadd.f32 %v120_v34, %v101_v53  ;;  %v104_v62 = vadd.f32 %v96_v50, %v77_v54  ;;  %v71_v63 = vmul.f32 %v64_v8, %v62_v51  ;;  %v98_v3 = vmul.f32 %v91_v9, %v89_v56 }
  0x32   :  { %v80_v2 = vadd.f32 %v72_v58, %v270_v0  ;;  %v132_v4 = vadd.f32 %v124_v43, %v105_v57  ;;  %v126_v5 = vmul.f32 %v304_v14, %v117_v60  ;;  %v125_v8 = vmul.f32 %v304_v14, %v116_v1 }
  0x33   :  { %v79_v6 = vadd.f32 %v71_v63, %v270_v0  ;;  %v131_v7 = vadd.f32 %v123_v55, %v104_v62 }
  0x34   :  { %149 = vrot.lane.b32.xlu1 %v130_v52, %s231_s22  ;;  %145 = vrot.lane.b32.xlu0 %v128_v61, %s231_s22  ;;  %v107_v10 = vadd.f32 %v99_v59, %v80_v2 }
  0x35   :  { %v106_v11 = vadd.f32 %v98_v3, %v79_v6 }
  0x36   :  { %v134_v12 = vadd.f32 %v126_v5, %v107_v10 }
  0x37   :  { %v133_v13 = vadd.f32 %v125_v8, %v106_v11 }
  0x38   :  { %153 = vrot.lane.b32.xlu1 %v132_v4, %s231_s22  ;;  %151 = vrot.lane.b32.xlu0 %v131_v7, %s231_s22 }
  0x3c   :  { %157 = vrot.lane.b32.xlu1 %v134_v12, %s231_s22  ;;  %155 = vrot.lane.b32.xlu0 %v133_v13, %s231_s22 }
  0xa2   :  { %v148_v9 = vpop.permute.xlu1 %147  ;;  %v144_v15 = vpop.permute.xlu0 %143 }
  0xa3   :  { %170 = vst.msk [vmem:[%s361_s3 + $0x11] sm:$0xff] %vm167_vm2, %v148_v9  ;;  %168 = vst.msk [vmem:[%s361_s3 + $0x1] sm:$0xff] %vm167_vm2, %v144_v15 }
  0xa6   :  { %v150_v0 = vpop.permute.xlu1 %149  ;;  %v146_v14 = vpop.permute.xlu0 %145 }
  0xa7   :  { %171 = vst.msk [vmem:[%s361_s3 + $0x19] sm:$0xff] %vm167_vm2, %v150_v0  ;;  %169 = vst.msk [vmem:[%s361_s3 + $0x9] sm:$0xff] %vm167_vm2, %v146_v14 }
  0xaa   :  { %v154_v16 = vpop.permute.xlu1 %153  ;;  %v152_v17 = vpop.permute.xlu0 %151 }
  0xab   :  { %173 = vst.msk [vmem:[%s361_s3 + $0x29] sm:$0xff] %vm167_vm2, %v154_v16  ;;  %172 = vst.msk [vmem:[%s361_s3 + $0x21] sm:$0xff] %vm167_vm2, %v152_v17 }
  0xae   :  { %v158_v18 = vpop.permute.xlu1 %157  ;;  %v156_v19 = vpop.permute.xlu0 %155 }
  0xaf   :  { %175 = vst.msk [vmem:[%s361_s3 + $0x39] sm:$0xff] %vm167_vm2, %v158_v18  ;;  %174 = vst.msk [vmem:[%s361_s3 + $0x31] sm:$0xff] %vm167_vm2, %v156_v19 }
  0xb0   :  { %180 = vsyncpa [#allocation4], 1 }
  0xb1   :  { %181 = vsyncpa [#allocation5], 1 }

</bundles_post_ra>
